<compile_context>
chip_gen: v7x
topology: tpu7x:2x2x1
jax: 0.10.0
libtpu: 0.0.40
codegen_flags: <defaults>
</compile_context>

<pallas_src>
import jax
import jax.numpy as jnp
from jax import lax
from jax.experimental import pallas as pl
from jax.experimental.pallas import tpu as pltpu


def _round_up(a, m):
    return ((a + m - 1) // m) * m


_SUBLANE = {4: 8, 2: 16, 1: 32}       # sublane tile per itemsize
_BLOCK_M_CAP = 512                    # edges per grid step (cap)
_RESIDENT_W_MAX_BYTES = 24 << 20      # keep resident-W safe on v7x (64 MiB/TC)
_TK_FALLBACK = 1024                   # K tile on the oversized-W fallback path


def _pick_block_m(M, cap, sub):
    """Largest block_m <= cap that is a multiple of `sub`, preferring divisors of M."""
    if M <= cap:
        return _round_up(max(M, 1), sub)
    bm = (cap // sub) * sub
    while bm >= sub:
        if M % bm == 0:
            return bm
        bm -= sub
    return (cap // sub) * sub


def _stable_sigmoid(z, out_dtype):
    # sigmoid(z) = 1/(1+e^-|z|) if z>=0 else e^-|z|/(1+e^-|z|)  (no inf intermediates)
    e = jnp.exp(-jnp.abs(z))                                  # EUP
    approx = jnp.dtype(out_dtype) != jnp.dtype(jnp.float32)
    inv = pl.reciprocal(1.0 + e, approx=approx)               # EUP vrcp when approx
    return jnp.where(z >= 0, inv, e * inv).astype(out_dtype)


# ----------------------------- kernels ------------------------------------ #

def _resident_kernel_m_major(x_ref, w_ref, b_ref, o_ref):
    # x: (block_m, K)  w: (N, K)  b: (1, N)  o: (block_m, N)
    z = lax.dot_general(
        x_ref[...], w_ref[...],
        dimension_numbers=(((1,), (1,)), ((), ())),
        preferred_element_type=jnp.float32,
    )
    z = z + b_ref[...].astype(jnp.float32)
    o_ref[...] = _stable_sigmoid(z, o_ref.dtype)


def _resident_kernel_n_major(x_ref, w_ref, b_ref, o_ref):
    # Lane-dense variant: x: (block_m, K)  w: (N, K)  b: (N, 1)  o: (N, block_m)
    z = lax.dot_general(
        w_ref[...], x_ref[...],
        dimension_numbers=(((1,), (1,)), ((), ())),
        preferred_element_type=jnp.float32,
    )
    z = z + b_ref[...].astype(jnp.float32)
    o_ref[...] = _stable_sigmoid(z, o_ref.dtype)


def _tiled_kernel(x_ref, w_ref, b_ref, o_ref, acc_ref):
    # Fallback for oversized W.  x: (block_m, tk)  w: (N, tk)  b: (1, N)
    # o: (block_m, N)  acc: (block_m, N) f32, resident across the K axis.
    k = pl.program_id(1)
    partial = lax.dot_general(
        x_ref[...], w_ref[...],
        dimension_numbers=(((1,), (1,)), ((), ())),
        preferred_element_type=jnp.float32,
    )

    @pl.when(k == 0)
    def _():
        acc_ref[...] = partial          # assign, not zero + add

    @pl.when(k != 0)
    def _():
        acc_ref[...] += partial

    @pl.when(k == pl.num_programs(1) - 1)
    def _():
        z = acc_ref[...] + b_ref[...].astype(jnp.float32)
        o_ref[...] = _stable_sigmoid(z, o_ref.dtype)


# ----------------------------- wrapper ------------------------------------ #

def edge_cost_predictor_batched(X, W, b, *, force_tiled=False):
    """sigmoid(X @ W.T + b) for a batch of flattened edge-feature rows.

    X: (M, K)  -- M edges, each flattened to input_size = K
    W: (N, K)  -- nn.Linear.weight layout (no transpose needed)
    b: (N,)    -- nn.Linear.bias
    returns (M, N) in X.dtype
    """
    M, K = X.shape
    N, Kw = W.shape
    assert Kw == K and b.shape == (N,)

    out_dtype = X.dtype
    x_item = jnp.dtype(X.dtype).itemsize
    w_item = jnp.dtype(W.dtype).itemsize
    o_item = jnp.dtype(out_dtype).itemsize
    sub = _SUBLANE.get(x_item, 8)

    block_m = _pick_block_m(M, _BLOCK_M_CAP, sub)
    M_pad = _round_up(M, block_m)
    X_p = jnp.pad(X, ((0, M_pad - M), (0, 0))) if M_pad != M else X
    b_f32 = b.astype(jnp.float32)

    w_bytes = N * K * w_item
    resident = (w_bytes <= _RESIDENT_W_MAX_BYTES) and not force_tiled

    if resident:
        grid = (M_pad // block_m,)
        n_major = (N < 128) and (block_m >= 128)

        if n_major:
            out_shape = jax.ShapeDtypeStruct((N, M_pad), out_dtype)
            out_spec = pl.BlockSpec((N, block_m), lambda i: (0, i))
            b_arr = b_f32.reshape(N, 1)
            b_spec = pl.BlockSpec((N, 1), lambda i: (0, 0))
            kernel = _resident_kernel_n_major
        else:
            out_shape = jax.ShapeDtypeStruct((M_pad, N), out_dtype)
            out_spec = pl.BlockSpec((block_m, N), lambda i: (i, 0))
            b_arr = b_f32.reshape(1, N)
            b_spec = pl.BlockSpec((1, N), lambda i: (0, 0))
            kernel = _resident_kernel_m_major

        in_specs = [
            pl.BlockSpec((block_m, K), lambda i: (i, 0)),   # X row block
            pl.BlockSpec((N, K), lambda i: (0, 0)),         # W resident, fetched once
            b_spec,
        ]

        vmem_needed = (2 * block_m * K * x_item      # double-buffered X blocks
                       + 2 * w_bytes                 # W (constant-index block)
                       + 2 * block_m * N * o_item    # output blocks
                       + 8 * N * 4)
        vmem_limit = int(min(max(2 * vmem_needed + (2 << 20), 32 << 20), 56 << 20))

        cost = pl.CostEstimate(
            flops=2 * M_pad * K * N,
            transcendentals=M_pad * N,
            bytes_accessed=(M_pad * K * x_item + w_bytes + N * 4
                            + M_pad * N * o_item),
        )

        out = pl.pallas_call(
            kernel,
            out_shape=out_shape,
            grid_spec=pltpu.PrefetchScalarGridSpec(
                num_scalar_prefetch=0,
                grid=grid,
                in_specs=in_specs,
                out_specs=out_spec,
            ),
            compiler_params=pltpu.CompilerParams(
                dimension_semantics=("parallel",),
                vmem_limit_bytes=vmem_limit,
            ),
            cost_estimate=cost,
        )(X_p, W, b_arr)

        if n_major:
            return out[:, :M].T
        return out[:M]

    # ----------------- K-tiled fallback (oversized W) ---------------------- #
    tk = _TK_FALLBACK
    K_pad = _round_up(K, tk)
    if K_pad != K:
        X_p = jnp.pad(X_p, ((0, 0), (0, K_pad - K)))
        W = jnp.pad(W, ((0, 0), (0, K_pad - K)))
    b_arr = b_f32.reshape(1, N)

    grid = (M_pad // block_m, K_pad // tk)

    vmem_needed = (2 * block_m * tk * x_item
                   + 2 * N * tk * w_item
                   + 2 * block_m * N * o_item
                   + block_m * N * 4          # accumulator scratch
                   + 8 * N * 4)
    vmem_limit = int(min(max(2 * vmem_needed + (2 << 20), 32 << 20), 56 << 20))

    cost = pl.CostEstimate(
        flops=2 * M_pad * K_pad * N,
        transcendentals=M_pad * N,
        bytes_accessed=(M_pad * K_pad * x_item
                        + grid[0] * N * K_pad * w_item   # W refetched per M tile
                        + N * 4 + M_pad * N * o_item),
    )

    out = pl.pallas_call(
        _tiled_kernel,
        out_shape=jax.ShapeDtypeStruct((M_pad, N), out_dtype),
        grid_spec=pltpu.PrefetchScalarGridSpec(
            num_scalar_prefetch=0,
            grid=grid,
            in_specs=[
                pl.BlockSpec((block_m, tk), lambda i, k: (i, k)),
                pl.BlockSpec((N, tk), lambda i, k: (0, k)),
                pl.BlockSpec((1, N), lambda i, k: (0, 0)),
            ],
            out_specs=pl.BlockSpec((block_m, N), lambda i, k: (i, 0)),
            scratch_shapes=[pltpu.VMEM((block_m, N), jnp.float32)],
        ),
        compiler_params=pltpu.CompilerParams(
            dimension_semantics=("parallel", "arbitrary"),
            vmem_limit_bytes=vmem_limit,
        ),
        cost_estimate=cost,
    )(X_p, W, b_arr)

    return out[:M]


def edge_cost_predictor(x, W, b):
    """Module-faithful forward: x.view(-1) -> Linear -> Sigmoid -> (output_size,)."""
    K = x.size
    N = W.shape[0]
    return edge_cost_predictor_batched(x.reshape(1, K), W, b).reshape(N)


if __name__ == "__main__":
    key = jax.random.PRNGKey(0)
    kx, kw, kb, kbatch, kbig = jax.random.split(key, 5)

    # Module-consistent small shapes: x has 2*4*16 = 128 elements.
    input_shape = (2, 4, 16)
    input_size = 2 * 4 * 16
    output_size = 32

    x = jax.random.normal(kx, input_shape, dtype=jnp.float32)
    bound = 1.0 / (input_size ** 0.5)
    W = jax.random.uniform(kw, (output_size, input_size),
                           minval=-bound, maxval=bound, dtype=jnp.float32)
    b = jax.random.uniform(kb, (output_size,),
                           minval=-bound, maxval=bound, dtype=jnp.float32)

    # 1) Module-faithful single-edge forward (f32, resident W, M-major epilogue).
    y = jax.block_until_ready(edge_cost_predictor(x, W, b))
    y_ref = jax.nn.sigmoid(W @ x.reshape(-1) + b)
    assert y.shape == (output_size,)
    assert jnp.allclose(y, y_ref, atol=1e-5, rtol=1e-5)

    # 2) Batched edges (performance path): lane-dense (N, block_m) tiles.
    M = 256
    Xb = jax.random.normal(kbatch, (M, input_size), dtype=jnp.float32)
    Yb = jax.block_until_ready(edge_cost_predictor_batched(Xb, W, b))
    Yb_ref = jax.nn.sigmoid(Xb @ W.T + b)
    assert Yb.shape == (M, output_size)
    assert jnp.allclose(Yb, Yb_ref, atol=1e-5, rtol=1e-5)

    # 3) bf16 activations/weights (halved HBM traffic; f32 accumulation).
    Yb16 = jax.block_until_ready(
        edge_cost_predictor_batched(Xb.astype(jnp.bfloat16),
                                    W.astype(jnp.bfloat16), b))
    assert jnp.allclose(Yb16.astype(jnp.float32), Yb_ref, atol=2e-2, rtol=2e-2)

    # 4) Exercise the K-tiled fallback path (forced; normally only for huge W).
    K_big, M_small = 2048, 64
    Xt = jax.random.normal(kbig, (M_small, K_big), dtype=jnp.float32)
    bound2 = 1.0 / (K_big ** 0.5)
    Wt = jax.random.uniform(kw, (output_size, K_big),
                            minval=-bound2, maxval=bound2, dtype=jnp.float32)
    Yt = jax.block_until_ready(
        edge_cost_predictor_batched(Xt, Wt, b, force_tiled=True))
    Yt_ref = jax.nn.sigmoid(Xt @ Wt.T + b)
    assert jnp.allclose(Yt, Yt_ref, atol=1e-4, rtol=1e-4)

    print("KERNEL_OK")
</pallas_src>

<mosaic_0001>
module attributes {stable_mosaic.version = 11 : i64} {
  func.func @_resident_kernel_m_major(%arg0: i32, %arg1: memref<8x128xf32, #tpu.memory_space<vmem>>, %arg2: memref<32x128xf32, #tpu.memory_space<vmem>>, %arg3: memref<1x32xf32, #tpu.memory_space<vmem>>, %arg4: memref<8x32xf32, #tpu.memory_space<vmem>>) attributes {dimension_semantics = [#tpu.dimension_semantics<parallel>], iteration_bounds = array<i64: 1>, scalar_prefetch = 0 : i64, scratch_operands = 0 : i64, tpu.core_type = #tpu.core_type<tc>, window_params = [{transform_indices = @transform_0, window_bounds = array<i64: 8, 128>}, {pipeline_mode = #tpu.pipeline_mode<synchronous>, transform_indices = @transform_1, window_bounds = array<i64: 32, 128>}, {pipeline_mode = #tpu.pipeline_mode<synchronous>, transform_indices = @transform_2, window_bounds = array<i64: 1, 32>}, {transform_indices = @transform_3, window_bounds = array<i64: 8, 32>}]} {
    %c0 = arith.constant 0 : index
    %c0_0 = arith.constant 0 : index
    %0 = vector.load %arg1[%c0, %c0_0] : memref<8x128xf32, #tpu.memory_space<vmem>>, vector<8x128xf32>
    %c0_1 = arith.constant 0 : index
    %c0_2 = arith.constant 0 : index
    %1 = vector.load %arg2[%c0_1, %c0_2] : memref<32x128xf32, #tpu.memory_space<vmem>>, vector<32x128xf32>
    %cst = arith.constant dense<0.000000e+00> : vector<8x32xf32>
    %2 = tpu.matmul %0, %1, %cst {dimension_numbers = #tpu.dot_dimension_numbers<[1], [1], [0], [0], [0, 0, 1, 0], [], []>} : vector<8x128xf32>, vector<32x128xf32>, vector<8x32xf32> -> vector<8x32xf32>
    %c0_3 = arith.constant 0 : index
    %c0_4 = arith.constant 0 : index
    %3 = vector.load %arg3[%c0_3, %c0_4] : memref<1x32xf32, #tpu.memory_space<vmem>>, vector<1x32xf32>
    %4 = vector.broadcast %3 : vector<1x32xf32> to vector<8x32xf32>
    %5 = arith.addf %2, %4 : vector<8x32xf32>
    %6 = math.absf %5 : vector<8x32xf32>
    %cst_5 = arith.constant 0.000000e+00 : f32
    %7 = vector.broadcast %cst_5 : f32 to vector<8x32xf32>
    %8 = arith.subf %7, %6 : vector<8x32xf32>
    %9 = math.exp %8 : vector<8x32xf32>
    %cst_6 = arith.constant 1.000000e+00 : f32
    %10 = vector.broadcast %cst_6 : f32 to vector<8x32xf32>
    %11 = arith.addf %10, %9 : vector<8x32xf32>
    %12 = tpu.reciprocal %11 : vector<8x32xf32> -> vector<8x32xf32>
    %cst_7 = arith.constant 0.000000e+00 : f32
    %13 = vector.broadcast %cst_7 : f32 to vector<8x32xf32>
    %14 = arith.cmpf oge, %5, %13 : vector<8x32xf32>
    %15 = arith.mulf %9, %12 : vector<8x32xf32>
    %16 = arith.select %14, %12, %15 : vector<8x32xi1>, vector<8x32xf32>
    %c0_8 = arith.constant 0 : index
    %c0_9 = arith.constant 0 : index
    %17 = vector.load %arg4[%c0_8, %c0_9] : memref<8x32xf32, #tpu.memory_space<vmem>>, vector<8x32xf32>
    tpu.vector_store %arg4[%c0_8, %c0_9], %16 {strides = array<i32>} : memref<8x32xf32, #tpu.memory_space<vmem>>, vector<8x32xf32>,
    return
  }
  func.func @transform_0(%arg0: i32) -> (i32, i32) {
    %c0_i32 = arith.constant 0 : i32
    %c0_i32_0 = arith.constant 0 : i32
    return %arg0, %c0_i32 : i32, i32
  }
  func.func @transform_1(%arg0: i32) -> (i32, i32) {
    %c0_i32 = arith.constant 0 : i32
    %c0_i32_0 = arith.constant 0 : i32
    %c0_i32_1 = arith.constant 0 : i32
    return %c0_i32, %c0_i32_0 : i32, i32
  }
  func.func @transform_2(%arg0: i32) -> (i32, i32) {
    %c0_i32 = arith.constant 0 : i32
    %c0_i32_0 = arith.constant 0 : i32
    %c0_i32_1 = arith.constant 0 : i32
    return %c0_i32, %c0_i32_0 : i32, i32
  }
  func.func @transform_3(%arg0: i32) -> (i32, i32) {
    %c0_i32 = arith.constant 0 : i32
    %c0_i32_0 = arith.constant 0 : i32
    return %arg0, %c0_i32 : i32, i32
  }
}

</mosaic_0001>

<bundles_post_ra>
// kernel: tpu_custom_call.1
= control target key start
LH: loop header
LB: loop body
LE: loop exit
PB: predicated region body
PF: predicated region fallthrough
CT: control target
= control target key end

     0   :  { %8 = vsyncpa [#allocation3], 0  ;;  %s331_s0 = inlined_call_operand.hbm [shape: f32[8,128], index: 0, kind: input, shape index: {}]   ;;  %s332_s1 = inlined_call_operand.hbm [shape: f32[32,128], index: 1, kind: input, shape index: {}]   ;;  %s333_s2 = inlined_call_operand.vmem [shape: f32[1,32], index: 2, kind: input, shape index: {}]   ;;  %s334_s3 = inlined_call_operand.hbm [shape: f32[8,32], index: 3, kind: output, shape index: {}]  }
   0x1   :  { %9 = vsyncpa [#allocation6], 0 }
   0x2   :  { %10 = vsyncpa [#allocation4], 0  ;;  %s257_s12 = smov [#allocation2]   ;;  %s258_s14 = smov [#allocation5]  }
   0x3   :  { %s17_s13 = sshll.u32 %s257_s12, 4  ;;  %s26_s15 = sshll.u32 %s258_s14, 4  ;;  %s18_s13 = int_to_ptr.vmem [resolvable:$true] %s17_s13  ;;  %s285_s15 = int_to_ptr.vmem [resolvable:$true] %s26_s15 }
   0x4   :  { %s185_s18 = scalar_lea.hbm %s331_s0, 128 }
   0x5   :  { %p186_p0 = scmp.ne.s32.totalorder %s331_s0, %s185_s18  ;;  %p189_p1 = scmp.lt.u32.totalorder %s185_s18, %s331_s0 }
   0x7   :  { %p191_p2 = pnand %p189_p1, %p186_p0 }
   0x9   :  { %194 = shalt.err (!%p191_p2)
}
   0xa   :  { %s195_s23 = scalar_lea.vmem %s18_s13, 128  ;;  %p200_p4 = scmp.lt.s32.totalorder %s18_s13, %s18_s13 }
   0xb   :  { %p196_p3 = scmp.ne.s32.totalorder %s18_s13, %s195_s23  ;;  %p201_p5 = scmp.lt.s32.totalorder %s195_s23, %s195_s23 }
   0xd   :  { %p202_p6 = por %p201_p5, %p200_p4 }
   0xf   :  { %p203_p7 = pnand %p202_p6, %p196_p3 }
  0x11   :  { %206 = shalt.err (!%p203_p7)
}
  0x12   :  { %20 = dma.hbm_to_vmem [thread:$0]  %s331_s0, 128, %s18_s13, [#allocation3]  }
  0x13   :  { %s207_s28 = scalar_lea.hbm %s332_s1, 512 }
  0x14   :  { %p208_p8 = scmp.ne.s32.totalorder %s332_s1, %s207_s28  ;;  %p211_p9 = scmp.lt.u32.totalorder %s207_s28, %s332_s1 }
  0x16   :  { %p213_p10 = pnand %p211_p9, %p208_p8 }
  0x18   :  { %216 = shalt.err (!%p213_p10)
}
  0x19   :  { %s217_s6 = scalar_lea.vmem %s285_s15, 512  ;;  %p222_p12 = scmp.lt.s32.totalorder %s285_s15, %s285_s15 }
  0x1a   :  { %p218_p11 = scmp.ne.s32.totalorder %s285_s15, %s217_s6  ;;  %p223_p13 = scmp.lt.s32.totalorder %s217_s6, %s217_s6 }
  0x1c   :  { %p224_p0 = por %p223_p13, %p222_p12 }
  0x1e   :  { %p225_p1 = pnand %p224_p0, %p218_p11 }
  0x20   :  { %228 = shalt.err (!%p225_p1)
}
  0x21   :  { %s259_s0 = smov 128   ;;  %s260_s7 = smov 8  }
  0x22   :  { %32 = dma.hbm_to_vmem [thread:$0]  %s332_s1, 512, %s285_s15, [#allocation6], %s259_s0, %s259_s0, %s260_s7  }
  0x23   :  { %251 = dma.done.wait [#allocation3], 128  }
  0x24   :  { %252 = vsyncadd [#allocation3], 4294967168 }
  0x25   :  { %253 = dma.done.wait [#allocation6], 512  }
  0x26   :  { %254 = vsyncadd [#allocation6], 4294966784  ;;  %v261_v0 = vmov 0.0|0.0   ;;  %vm262_vm0 = vmmov 0   ;;  %v263_v1 = vmov 0.0   ;;  %v42_v2 = vld [vmem:[#allocation5] sm:$0xff] }
  0x27   :  { %167 = vmatprep.subr.bf16.mxu0 %v261_v0  ;;  %164 = vmatprep.mubr.msk.f32.mxu0 %vm262_vm0, %v263_v1  ;;  %v43_v3 = vld [vmem:[#allocation5 + $0x8] sm:$0xff]  ;;  %v44_v5 = vld [vmem:[#allocation5 + $0x10] sm:$0xff]  ;;  %v45_v6 = vld [vmem:[#allocation5 + $0x18] sm:$0xff]  ;;  %s264_s11 = smov [#allocation7]   ;;  %vm132_vm1 = vcmask 261120  }
  0x28   :  { %v168_v4 = vpack.c.bf16 %v43_v3, %v42_v2  ;;  %v171_v7 = vpack.c.bf16 %v45_v6, %v44_v5  ;;  %v41_v8 = vld [vmem:[#allocation2] sm:$0xff]  ;;  %s140_s12 = sshll.u32 %s264_s11, 4  ;;  %s141_s12 = int_to_ptr.vmem [resolvable:$true] %s140_s12 }
  0x29   :  { %v150_v9 = vld [vmem:[%s333_s2] ss:$0 sm:$0xff]  ;;  %s229_s2 = scalar_lea.vmem %s141_s12, 128  ;;  %p234_p3 = scmp.lt.s32.totalorder %s141_s12, %s141_s12 }
  0x2a   :  { %169 = vmatpush3.bf16.xpose.msra.mxu0 %v168_v4  ;;  %p230_p2 = scmp.ne.s32.totalorder %s141_s12, %s229_s2  ;;  %p235_p4 = scmp.lt.s32.totalorder %s229_s2, %s229_s2 }
  0x2b   :  { %170 = vmatprep.subr.bf16.mxu0 %v261_v0 }
  0x2c   :  { %p236_p5 = por %p235_p4, %p234_p3 }
  0x2e   :  { %p237_p6 = pnand %p236_p5, %p230_p2 }
  0x32   :  { %172 = vmatpush3.bf16.xpose.msra.mxu0 %v171_v7 }
  0x39   :  { %165 = vmatmul.mubr.f32.vlgmr.msra.gmra.mrb[0].mxu0 %v41_v8 }
 0x10c   :  { %v119_v10 = vpop.f32.mrb[0].mxu0 }
 0x10d   :  { %v120_v11 = vadd.f32 %v150_v9, %v119_v10  ;;  %v166_v12 = vpop.f32.mrb[1].mxu0 }
 0x10f   :  { %v123_v13 = vand.u32 2147483647, %v120_v11  ;;  %vm129_vm2 = vcmp.ge.f32.partialorder %v120_v11, 0.0 }
 0x111   :  { %v124_v14 = vsub.f32 0.0, %v123_v13 }
 0x113   :  { %v125_v15 = vmul.f32 1.442695, %v124_v14 }
 0x115   :  { %181 = vpow2.f32 %v125_v15 }
 0x11f   :  { %v182_v16 = vpop.eup %181 }
 0x120   :  { %v127_v17 = vadd.f32 1.0, %v182_v16 }
 0x122   :  { %183 = vrcp.f32 %v127_v17 }
 0x12c   :  { %v184_v18 = vpop.eup %183 }
 0x12d   :  { %v130_v19 = vmul.f32 %v184_v18, %v182_v16 }
 0x12f   :  { %v131_v20 = vsel %vm129_vm2, %v184_v18, %v130_v19 }
 0x130   :  { %133 = vst.msk [vmem:[#allocation7] sm:$0xff] %vm132_vm1, %v131_v20 }
 0x131   :  { %240 = shalt.err (!%p237_p6)
}
 0x132   :  { %s241_s15 = scalar_lea.hbm %s334_s3, 128 }
 0x133   :  { %p242_p7 = scmp.ne.s32.totalorder %s334_s3, %s241_s15  ;;  %p245_p8 = scmp.lt.u32.totalorder %s241_s15, %s334_s3 }
 0x135   :  { %p247_p9 = pnand %p245_p8, %p242_p7 }
 0x137   :  { %250 = shalt.err (!%p247_p9)
}
 0x138   :  { %143 = dma.vmem_to_hbm [thread:$0]  %s141_s12, 128, %s334_s3, [#allocation4]  }
 0x139   :  { %255 = dma.done.wait [#allocation4], 128  }
 0x13a   :  { %256 = vsyncadd [#allocation4], 4294967168 }
 0x13b   :  { %147 = vsyncpa [#allocation3], 1 }
 0x13c   :  { %148 = vsyncpa [#allocation6], 1 }
 0x13d   :  { %149 = vsyncpa [#allocation4], 1 }

</bundles_post_ra>
